<compile_context>
chip_gen: v5e
topology: v5e:2x2
jax: 0.10.0
libtpu: 0.0.40
codegen_flags: <defaults>
</compile_context>

<pallas_src>
import functools

import jax
import jax.numpy as jnp
from jax.experimental import pallas as pl
from jax.experimental.pallas import tpu as pltpu


def _density_block_kernel(t_ref, x_ref, w_ref, b_ref, o_ref, *, num_grid):
    outd = num_grid + 1

    x = x_ref[...]                                  # (ind, TILE_N)  bf16
    w = w_ref[...]                                  # (outd, ind)    bf16
    b = b_ref[...].astype(jnp.float32)              # (outd, 1)

    # logits^T = W^T x^T + b  -> (outd, TILE_N), f32 accumulation on the MXU.
    logits = jnp.dot(w, x, preferred_element_type=jnp.float32) + b

    # Un-normalized softmax over the outd (sublane) axis; only the (1, TILE_N)
    # numerator is normalized at the very end.
    m = jnp.max(logits, axis=0, keepdims=True)      # (1, TILE_N)
    e = jnp.exp(logits - m)                         # (outd, TILE_N)
    denom = jnp.sum(e, axis=0, keepdims=True)       # (1, TILE_N)

    # comp_grid(t, num_grid)
    t = t_ref[...].astype(jnp.float32)              # (1, TILE_N)
    tg = t * jnp.float32(num_grid)
    U = jnp.ceil(tg)                                # (1, TILE_N)
    inter = 1.0 - (U - tg)                          # (1, TILE_N)
    L = U - 1.0
    L = jnp.where(L < 0.0, L + 1.0, L)              # L += (L < 0)
    Li = jnp.clip(L.astype(jnp.int32), 0, outd - 1)  # (1, TILE_N)
    Ui = jnp.clip(U.astype(jnp.int32), 0, outd - 1)  # (1, TILE_N)

    # Fused gather + interpolation as a sublane mask:
    #   L_out + (U_out - L_out)*inter == (1-inter)*L_out + inter*U_out
    # (the Li == Ui case sums to 1).
    row = jax.lax.broadcasted_iota(jnp.int32, (outd, 1), 0)          # (outd, 1)
    coeff = (jnp.where(row == Li, 1.0 - inter, 0.0)
             + jnp.where(row == Ui, inter, 0.0))                     # (outd, TILE_N)
    numer = jnp.sum(e * coeff, axis=0, keepdims=True)                # (1, TILE_N)

    o_ref[...] = (numer / denom).astype(o_ref.dtype)                 # lane-dense store


def _round_up(v, m):
    return ((v + m - 1) // m) * m


def density_block_forward(t, x, weight, bias, num_grid, *,
                          max_tile_n=4096, cast_to_bf16=True):
    """t: (N,) in [0,1]; x: (N, ind); weight: (ind, outd); bias: (outd,).

    Returns (N,) float32, matching Density_Block.forward.
    """
    N, ind = x.shape
    outd = num_grid + 1
    assert weight.shape == (ind, outd)
    assert bias.shape == (outd,)

    # Transposed working layout: batch on lanes, outd on sublanes.
    # (Wrapper-side transpose/cast is layout plumbing; it fuses with upstream
    # producers in a real model.  Callers that already hold x^T in bf16 can
    # skip this entirely.)
    x_t = x.T                                    # (ind, N)
    w_t = weight.T                               # (outd, ind)
    if cast_to_bf16:
        x_t = x_t.astype(jnp.bfloat16)
        w_t = w_t.astype(jnp.bfloat16)
    t2 = t.reshape(1, N).astype(jnp.float32)     # (1, N)
    b2 = bias.reshape(outd, 1).astype(jnp.float32)

    # Tile policy: lane-aligned (128) tiles, no jnp.pad copy of x (the ragged
    # last block is handled by Pallas; OOB lanes never mix with valid ones
    # because all reductions are over sublanes, and OOB output lanes are
    # dropped at writeback).  Keep >= 2 grid steps when N is large enough so
    # the "parallel" axis can shard across v7x's two TensorCores.
    if N <= 256:
        tile_n = N
    else:
        n_steps = max(pl.cdiv(N, max_tile_n), 2)
        tile_n = min(_round_up(pl.cdiv(N, n_steps), 128), _round_up(N, 128))
    grid = (pl.cdiv(N, tile_n),)

    kernel = functools.partial(_density_block_kernel, num_grid=num_grid)

    out = pl.pallas_call(
        kernel,
        out_shape=jax.ShapeDtypeStruct((1, N), jnp.float32),
        grid=grid,
        in_specs=[
            pl.BlockSpec((1, tile_n), lambda i: (0, i)),      # t   (lane-dense)
            pl.BlockSpec((ind, tile_n), lambda i: (0, i)),    # x^T (lane-dense)
            pl.BlockSpec((outd, ind), lambda i: (0, 0)),      # W^T (VMEM-resident)
            pl.BlockSpec((outd, 1), lambda i: (0, 0)),        # bias (resident)
        ],
        out_specs=pl.BlockSpec((1, tile_n), lambda i: (0, i)),
        compiler_params=pltpu.CompilerParams(
            dimension_semantics=("parallel",)),
    )(t2, x_t, w_t, b2)

    return out[0]


def _reference(t, x, weight, bias, num_grid):
    """Pure-JAX reference mirroring the PyTorch module exactly."""
    out = x @ weight + bias
    out = jax.nn.softmax(out, axis=1)
    tg = t * num_grid
    U = jnp.ceil(tg)
    inter = 1.0 - (U - tg)
    L = U - 1.0
    L = jnp.where(L < 0.0, L + 1.0, L)
    Li = L.astype(jnp.int32)
    Ui = U.astype(jnp.int32)
    rows = jnp.arange(x.shape[0])
    L_out = out[rows, Li]
    U_out = out[rows, Ui]
    return L_out + (U_out - L_out) * inter


if __name__ == "__main__":
    # Module config: Density_Block(num_grid=10, ind=32, isbias=1)
    num_grid = 10
    ind = 32
    outd = num_grid + 1
    N = 8

    key = jax.random.PRNGKey(0)
    k_w, k_b, k_x, k_t = jax.random.split(key, 4)

    # torch.rand -> uniform [0, 1)
    weight = jax.random.uniform(k_w, (ind, outd), dtype=jnp.float32)
    bias = jax.random.uniform(k_b, (outd,), dtype=jnp.float32)
    x = jax.random.uniform(k_x, (N, ind), dtype=jnp.float32)
    t = jax.random.uniform(k_t, (N,), dtype=jnp.float32)  # treatment in [0, 1]

    out = density_block_forward(t, x, weight, bias, num_grid)
    out = jax.block_until_ready(out)
    assert out.shape == (N,)

    # bf16-consistent reference (the kernel casts x/W to bf16, accumulates f32).
    x_bf = x.astype(jnp.bfloat16).astype(jnp.float32)
    w_bf = weight.astype(jnp.bfloat16).astype(jnp.float32)
    ref = _reference(t, x_bf, w_bf, bias, num_grid)
    assert jnp.allclose(out, ref, atol=1e-4, rtol=1e-4), (out, ref)

    # Sanity vs exact f32 module semantics (tolerance covers bf16 rounding of x/W).
    ref_f32 = _reference(t, x, weight, bias, num_grid)
    assert jnp.allclose(out, ref_f32, atol=3e-2, rtol=3e-2), (out, ref_f32)

    # Exercise the multi-step (parallel) grid and the ragged last block.
    N2 = 300
    k_x2, k_t2 = jax.random.split(jax.random.PRNGKey(1), 2)
    x2 = jax.random.uniform(k_x2, (N2, ind), dtype=jnp.float32)
    t2 = jax.random.uniform(k_t2, (N2,), dtype=jnp.float32)
    out2 = jax.block_until_ready(
        density_block_forward(t2, x2, weight, bias, num_grid))
    ref2 = _reference(t2,
                      x2.astype(jnp.bfloat16).astype(jnp.float32),
                      w_bf, bias, num_grid)
    assert out2.shape == (N2,)
    assert jnp.allclose(out2, ref2, atol=1e-4, rtol=1e-4), (out2, ref2)

    print("KERNEL_OK")
</pallas_src>

<mosaic_0001>
module attributes {stable_mosaic.version = 11 : i64} {
  func.func @_density_block_kernel(%arg0: i32, %arg1: memref<1x8xf32, #tpu.memory_space<vmem>>, %arg2: memref<32x8xbf16, #tpu.memory_space<vmem>>, %arg3: memref<11x32xbf16, #tpu.memory_space<vmem>>, %arg4: memref<11x1xf32, #tpu.memory_space<vmem>>, %arg5: memref<1x8xf32, #tpu.memory_space<vmem>>) attributes {dimension_semantics = [#tpu.dimension_semantics<parallel>], iteration_bounds = array<i64: 1>, scalar_prefetch = 0 : i64, scratch_operands = 0 : i64, tpu.core_type = #tpu.core_type<tc>, window_params = [{transform_indices = @transform_0, window_bounds = array<i64: 1, 8>}, {transform_indices = @transform_1, window_bounds = array<i64: 32, 8>}, {pipeline_mode = #tpu.pipeline_mode<synchronous>, transform_indices = @transform_2, window_bounds = array<i64: 11, 32>}, {pipeline_mode = #tpu.pipeline_mode<synchronous>, transform_indices = @transform_3, window_bounds = array<i64: 11, 1>}, {transform_indices = @transform_4, window_bounds = array<i64: 1, 8>}]} {
    %c0 = arith.constant 0 : index
    %c0_0 = arith.constant 0 : index
    %0 = vector.load %arg2[%c0, %c0_0] : memref<32x8xbf16, #tpu.memory_space<vmem>>, vector<32x8xbf16>
    %c0_1 = arith.constant 0 : index
    %c0_2 = arith.constant 0 : index
    %1 = vector.load %arg3[%c0_1, %c0_2] : memref<11x32xbf16, #tpu.memory_space<vmem>>, vector<11x32xbf16>
    %c0_3 = arith.constant 0 : index
    %c0_4 = arith.constant 0 : index
    %2 = vector.load %arg4[%c0_3, %c0_4] : memref<11x1xf32, #tpu.memory_space<vmem>>, vector<11x1xf32>
    %cst = arith.constant dense<0.000000e+00> : vector<11x8xf32>
    %3 = tpu.matmul %1, %0, %cst {dimension_numbers = #tpu.dot_dimension_numbers<[1], [0], [0], [1], [0, 0, 1, 1], [], []>} : vector<11x32xbf16>, vector<32x8xbf16>, vector<11x8xf32> -> vector<11x8xf32>
    %4 = vector.broadcast %2 : vector<11x1xf32> to vector<11x8xf32>
    %5 = arith.addf %3, %4 : vector<11x8xf32>
    %cst_5 = arith.constant dense<0xFF800000> : vector<8xf32>
    %6 = vector.multi_reduction <maximumf>, %5, %cst_5 [0] : vector<11x8xf32> to vector<8xf32>
    %7 = vector.shape_cast %6 : vector<8xf32> to vector<1x8xf32>
    %8 = vector.broadcast %7 : vector<1x8xf32> to vector<11x8xf32>
    %9 = arith.subf %5, %8 : vector<11x8xf32>
    %10 = math.exp %9 : vector<11x8xf32>
    %cst_6 = arith.constant dense<0.000000e+00> : vector<8xf32>
    %11 = vector.multi_reduction <add>, %10, %cst_6 [0] : vector<11x8xf32> to vector<8xf32>
    %12 = vector.shape_cast %11 : vector<8xf32> to vector<1x8xf32>
    %c0_7 = arith.constant 0 : index
    %c0_8 = arith.constant 0 : index
    %13 = vector.load %arg1[%c0_7, %c0_8] : memref<1x8xf32, #tpu.memory_space<vmem>>, vector<1x8xf32>
    %cst_9 = arith.constant 1.000000e+01 : f32
    %14 = vector.broadcast %cst_9 : f32 to vector<1x8xf32>
    %15 = arith.mulf %13, %14 : vector<1x8xf32>
    %16 = math.ceil %15 : vector<1x8xf32>
    %17 = arith.subf %16, %15 : vector<1x8xf32>
    %cst_10 = arith.constant 1.000000e+00 : f32
    %18 = vector.broadcast %cst_10 : f32 to vector<1x8xf32>
    %19 = arith.subf %18, %17 : vector<1x8xf32>
    %cst_11 = arith.constant 1.000000e+00 : f32
    %20 = vector.broadcast %cst_11 : f32 to vector<1x8xf32>
    %21 = arith.subf %16, %20 : vector<1x8xf32>
    %cst_12 = arith.constant 0.000000e+00 : f32
    %22 = vector.broadcast %cst_12 : f32 to vector<1x8xf32>
    %23 = arith.cmpf olt, %21, %22 : vector<1x8xf32>
    %cst_13 = arith.constant 1.000000e+00 : f32
    %24 = vector.broadcast %cst_13 : f32 to vector<1x8xf32>
    %25 = arith.addf %21, %24 : vector<1x8xf32>
    %26 = arith.select %23, %25, %21 : vector<1x8xi1>, vector<1x8xf32>
    %27 = arith.fptosi %26 : vector<1x8xf32> to vector<1x8xi32>
    %c0_i32 = arith.constant 0 : i32
    %c10_i32 = arith.constant 10 : i32
    %28 = vector.broadcast %c0_i32 : i32 to vector<1x8xi32>
    %29 = arith.maxsi %28, %27 : vector<1x8xi32>
    %30 = vector.broadcast %c10_i32 : i32 to vector<1x8xi32>
    %31 = arith.minsi %30, %29 : vector<1x8xi32>
    %32 = arith.fptosi %16 : vector<1x8xf32> to vector<1x8xi32>
    %c0_i32_14 = arith.constant 0 : i32
    %c10_i32_15 = arith.constant 10 : i32
    %33 = vector.broadcast %c0_i32_14 : i32 to vector<1x8xi32>
    %34 = arith.maxsi %33, %32 : vector<1x8xi32>
    %35 = vector.broadcast %c10_i32_15 : i32 to vector<1x8xi32>
    %36 = arith.minsi %35, %34 : vector<1x8xi32>
    %37 = tpu.iota {dimensions = array<i32: 0>} : vector<11x1xi32>
    %38 = vector.broadcast %37 : vector<11x1xi32> to vector<11x8xi32>
    %39 = vector.broadcast %31 : vector<1x8xi32> to vector<11x8xi32>
    %40 = arith.cmpi eq, %38, %39 : vector<11x8xi32>
    %cst_16 = arith.constant 1.000000e+00 : f32
    %41 = vector.broadcast %cst_16 : f32 to vector<1x8xf32>
    %42 = arith.subf %41, %19 : vector<1x8xf32>
    %cst_17 = arith.constant 0.000000e+00 : f32
    %43 = vector.shape_cast %42 : vector<1x8xf32> to vector<1x8xf32>
    %44 = vector.broadcast %43 : vector<1x8xf32> to vector<11x8xf32>
    %45 = vector.broadcast %cst_17 : f32 to vector<11x8xf32>
    %46 = arith.select %40, %44, %45 : vector<11x8xi1>, vector<11x8xf32>
    %47 = vector.broadcast %37 : vector<11x1xi32> to vector<11x8xi32>
    %48 = vector.broadcast %36 : vector<1x8xi32> to vector<11x8xi32>
    %49 = arith.cmpi eq, %47, %48 : vector<11x8xi32>
    %cst_18 = arith.constant 0.000000e+00 : f32
    %50 = vector.shape_cast %19 : vector<1x8xf32> to vector<1x8xf32>
    %51 = vector.broadcast %50 : vector<1x8xf32> to vector<11x8xf32>
    %52 = vector.broadcast %cst_18 : f32 to vector<11x8xf32>
    %53 = arith.select %49, %51, %52 : vector<11x8xi1>, vector<11x8xf32>
    %54 = arith.addf %46, %53 : vector<11x8xf32>
    %55 = arith.mulf %10, %54 : vector<11x8xf32>
    %cst_19 = arith.constant dense<0.000000e+00> : vector<8xf32>
    %56 = vector.multi_reduction <add>, %55, %cst_19 [0] : vector<11x8xf32> to vector<8xf32>
    %57 = vector.shape_cast %56 : vector<8xf32> to vector<1x8xf32>
    %58 = arith.divf %57, %12 : vector<1x8xf32>
    %c0_20 = arith.constant 0 : index
    %c0_21 = arith.constant 0 : index
    %59 = vector.load %arg5[%c0_20, %c0_21] : memref<1x8xf32, #tpu.memory_space<vmem>>, vector<1x8xf32>
    tpu.vector_store %arg5[%c0_20, %c0_21], %58 {strides = array<i32>} : memref<1x8xf32, #tpu.memory_space<vmem>>, vector<1x8xf32>,
    return
  }
  func.func @transform_0(%arg0: i32) -> (i32, i32) {
    %c0_i32 = arith.constant 0 : i32
    %c0_i32_0 = arith.constant 0 : i32
    return %c0_i32, %arg0 : i32, i32
  }
  func.func @transform_1(%arg0: i32) -> (i32, i32) {
    %c0_i32 = arith.constant 0 : i32
    %c0_i32_0 = arith.constant 0 : i32
    return %c0_i32, %arg0 : i32, i32
  }
  func.func @transform_2(%arg0: i32) -> (i32, i32) {
    %c0_i32 = arith.constant 0 : i32
    %c0_i32_0 = arith.constant 0 : i32
    %c0_i32_1 = arith.constant 0 : i32
    return %c0_i32, %c0_i32_0 : i32, i32
  }
  func.func @transform_3(%arg0: i32) -> (i32, i32) {
    %c0_i32 = arith.constant 0 : i32
    %c0_i32_0 = arith.constant 0 : i32
    %c0_i32_1 = arith.constant 0 : i32
    return %c0_i32, %c0_i32_0 : i32, i32
  }
  func.func @transform_4(%arg0: i32) -> (i32, i32) {
    %c0_i32 = arith.constant 0 : i32
    %c0_i32_0 = arith.constant 0 : i32
    return %c0_i32, %arg0 : i32, i32
  }
}

</mosaic_0001>

<bundles_post_ra>
// kernel: tpu_custom_call.1
= control target key start
LH: loop header
LB: loop body
LE: loop exit
PB: predicated region body
PF: predicated region fallthrough
CT: control target
= control target key end

     0   :  { %v242_v2 = vmov 0   ;;  %s299_s0 = inlined_call_operand.vmem [shape: f32[1,8], index: 0, kind: input, shape index: {}]   ;;  %s300_s1 = inlined_call_operand.vmem [shape: bf16[32,8], index: 1, kind: input, shape index: {}]   ;;  %s301_s2 = inlined_call_operand.vmem [shape: bf16[11,32], index: 2, kind: input, shape index: {}]   ;;  %s302_s3 = inlined_call_operand.vmem [shape: f32[11,1], index: 3, kind: input, shape index: {}]   ;;  %s303_s4 = inlined_call_operand.hbm [shape: f32[1,8], index: 4, kind: output, shape index: {}]  }
   0x1   :  { %v198_v0 = vld [vmem:[%s300_s1 + $0x8] sm:$0xff]  ;;  %v197_v1 = vld [vmem:[%s300_s1] sm:$0xff]  ;;  %209 = vset.pattern.permute.xlu0 %v242_v2 }
   0x2   :  { %v25_v3 = vld [vmem:[%s302_s3] sm:$0xff]  ;;  %64 = vmatpush.bf16.msra.mxu0 %v198_v0 }
   0x3   :  { %v185_v4 = vld [vmem:[%s301_s2] sm:$0xf]  ;;  %v199_v5 = vld [vmem:[%s301_s2] sm:$0x30]  ;;  %29 = vperm.xlu0 %209, %v25_v3  }
   0x4   :  { %9 = vsyncpa [#allocation3], 0  ;;  %v186_v6 = vor.u32 %v199_v5, %v185_v4  ;;  %vm54_vm0 = vcmask 261120   ;;  %v26_v7 = vld [vmem:[%s302_s3 + $0x8] sm:$0x7]  ;;  %vm72_vm3 = vcmask 64512   ;;  %v117_v33 = vlaneseq }
   0x5   :  { %v98_v8 = vld [vmem:[%s299_s0] sm:$0x1]  ;;  %vm74_vm4 = vcmask 59392   ;;  %s243_s0 = smov [#allocation2]   ;;  %s174_s29 = sshll.u32 %s303_s4, 4  ;;  %s175_s29 = int_to_ptr.hbm [resolvable:$true] %s174_s29 }
   0x6   :  { %65 = vmatpush.bf16.msra.mxu0 %v197_v1  ;;  %v99_v9 = vmul.f32 10.0, %v98_v8  ;;  %v118_v39 = vshrl.u32 %v117_v33, 7  ;;  %s172_s2 = sshll.u32 %s243_s0, 4  ;;  %s173_s2 = int_to_ptr.vmem [resolvable:$true] %s172_s2 }
   0x8   :  { %v100_v10 = vceil.f32 %v99_v9  ;;  %v119_v45 = vadd.s32 8, %v118_v39 }
   0x9   :  { %195 = vmatmul.msk.bf16.vlgmr.msra.gmra.mxu0 %vm54_vm0, %v186_v6 }
   0xa   :  { %v196_v11 = vadd.f32 -1.0, %v100_v10  ;;  %v206_v21 = vcvt.f32.s32 %v100_v10  ;;  %v101_v29 = vsub.f32 %v100_v10, %v99_v9 }
   0xb   :  { %34 = vperm.xlu0 %209, %v26_v7  }
   0xc   :  { %v105_v12 = vadd.f32 1.0, %v196_v11  ;;  %vm104_vm1 = vcmp.lt.f32.partialorder %v196_v11, 0.0  ;;  %vm113_vm6 = vcmp.gt.s32.totalorder %v206_v21, 0  ;;  %v102_v35 = vsub.f32 1.0, %v101_v29 }
   0xd   :  { %v114_v31 = vsel %vm113_vm6, %v206_v21, 0 }
   0xe   :  { %v106_v13 = vsel %vm104_vm1, %v105_v12, %v196_v11  ;;  %vm115_vm8 = vcmp.lt.s32.totalorder %v114_v31, 10  ;;  %v123_v41 = vsub.f32 1.0, %v102_v35  ;;  %v133_v49 = vperm.slane %v102_v35, 0 }
   0xf   :  { %v201_v16 = vceil.f32 %v106_v13  ;;  %v202_v17 = vfloor.f32 %v106_v13  ;;  %vm200_vm2 = vcmp.lt.s32.totalorder %v106_v13, 0  ;;  %v116_v38 = vsel %vm115_vm8, %v114_v31, 10 }
  0x10   :  { %v129_v43 = vperm.slane %v116_v38, 0  ;;  %v125_v48 = vperm.slane %v123_v41, 0  ;;  %vm165_vm1 = vcmask 57344  }
  0x11   :  { %v203_v18 = vsel %vm200_vm2, %v201_v16, %v202_v17 }
  0x12   :  { %v204_v20 = vcvt.f32.s32 %v203_v18  ;;  %vm130_vm10 = vcmp.eq.s32.totalorder %v118_v39, %v129_v43  ;;  %vm131_vm12 = vcmp.eq.s32.totalorder %v119_v45, %v129_v43 }
  0x13   :  { %v135_v53 = vsel %vm130_vm10, %v133_v49, 0.0  ;;  %v136_v55 = vsel %vm131_vm12, %v133_v49, 0.0 }
  0x14   :  { %vm108_vm5 = vcmp.gt.s32.totalorder %v204_v20, 0 }
  0x15   :  { %v109_v30 = vsel %vm108_vm5, %v204_v20, 0 }
  0x16   :  { %vm110_vm7 = vcmp.lt.s32.totalorder %v109_v30, 10 }
  0x17   :  { %v111_v37 = vsel %vm110_vm7, %v109_v30, 10 }
  0x18   :  { %v120_v42 = vperm.slane %v111_v37, 0 }
  0x1a   :  { %vm121_vm9 = vcmp.eq.s32.totalorder %v118_v39, %v120_v42  ;;  %vm122_vm11 = vcmp.eq.s32.totalorder %v119_v45, %v120_v42 }
  0x1b   :  { %v127_v52 = vsel %vm121_vm9, %v125_v48, 0.0  ;;  %v128_v54 = vsel %vm122_vm11, %v125_v48, 0.0 }
  0x1c   :  { %v137_v56 = vadd.f32 %v135_v53, %v127_v52  ;;  %v138_v57 = vadd.f32 %v136_v55, %v128_v54 }
  0x75   :  { %v30_v14 = vpop.permute.xlu0 %29 }
  0x7d   :  { %v35_v22 = vpop.permute.xlu0 %34 }
  0x86   :  { %v67_v15 = vpop.f32.mrf.mxu0 }
  0x87   :  { %v68_v19 = vadd.f32 %v67_v15, %v30_v14 }
  0x89   :  { %v73_v25 = vsel %vm72_vm3, %v68_v19, -inf }
  0x8e   :  { %v69_v23 = vpop.f32.mrf.mxu0 }
  0x8f   :  { %v70_v24 = vadd.f32 %v69_v23, %v35_v22 }
  0x91   :  { %v75_v26 = vsel %vm74_vm4, %v70_v24, -inf }
  0x92   :  { %v76_v27 = vmax.f32 %v73_v25, %v75_v26 }
  0x94   :  { %v77_v28 = vrot.slane %v76_v27, 4 }
  0x96   :  { %v78_v32 = vmax.f32 %v76_v27, %v77_v28 }
  0x98   :  { %v79_v34 = vrot.slane %v78_v32, 2 }
  0x9a   :  { %v80_v36 = vmax.f32 %v78_v32, %v79_v34 }
  0x9c   :  { %v81_v40 = vrot.slane %v80_v36, 1 }
  0x9e   :  { %v82_v44 = vmax.f32 %v80_v36, %v81_v40 }
  0xa0   :  { %v83_v46 = vsub.f32 %v68_v19, %v82_v44  ;;  %v84_v47 = vsub.f32 %v70_v24, %v82_v44 }
  0xa2   :  { %v85_v50 = vmul.f32 1.442695, %v83_v46  ;;  %v87_v51 = vmul.f32 1.442695, %v84_v47 }
  0xa4   :  { %210 = vpow2.f32 %v85_v50 }
  0xa5   :  { %212 = vpow2.f32 %v87_v51 }
  0xaa   :  { %v211_v58 = vpop.eup %210 }
  0xab   :  { %v213_v59 = vpop.eup %212  ;;  %v89_v60 = vsel %vm72_vm3, %v211_v58, 0.0  ;;  %v139_v61 = vmul.f32 %v211_v58, %v137_v56 }
  0xac   :  { %v90_v62 = vsel %vm74_vm4, %v213_v59, 0.0  ;;  %v140_v63 = vmul.f32 %v213_v59, %v138_v57 }
  0xad   :  { %v91_v0 = vadd.f32 %v90_v62, %v89_v60  ;;  %v141_v2 = vsel %vm72_vm3, %v139_v61, 0.0 }
  0xae   :  { %v142_v3 = vsel %vm74_vm4, %v140_v63, 0.0 }
  0xaf   :  { %v92_v1 = vrot.slane %v91_v0, 4  ;;  %v143_v5 = vadd.f32 %v142_v3, %v141_v2 }
  0xb1   :  { %v93_v4 = vadd.f32 %v92_v1, %v91_v0  ;;  %v144_v8 = vrot.slane %v143_v5, 4 }
  0xb3   :  { %v94_v6 = vrot.slane %v93_v4, 2  ;;  %v145_v11 = vadd.f32 %v144_v8, %v143_v5 }
  0xb5   :  { %v95_v7 = vadd.f32 %v94_v6, %v93_v4  ;;  %v146_v12 = vrot.slane %v145_v11, 2 }
  0xb7   :  { %v96_v9 = vrot.slane %v95_v7, 1  ;;  %v147_v14 = vadd.f32 %v146_v12, %v145_v11 }
  0xb9   :  { %v97_v10 = vadd.f32 %v96_v9, %v95_v7  ;;  %v148_v18 = vrot.slane %v147_v14, 1 }
  0xbb   :  { %214 = vrcp.f32 %v97_v10  ;;  %v161_v17 = vand.u32 2147483648, %v97_v10  ;;  %v159_v20 = vand.u32 2147483647, %v97_v10  ;;  %vm155_vm14 = vweird.f32 %v97_v10 }
  0xbc   :  { %v149_v23 = vadd.f32 %v148_v18, %v147_v14 }
  0xbd   :  { %v162_v22 = vor.u32 1.1754944e-38, %v161_v17  ;;  %vm160_vm0 = vcmp.eq.f32.partialorder %v159_v20, 8.507059e+37 }
  0xc1   :  { %v215_v13 = vpop.eup %214 }
  0xc2   :  { %v151_v15 = vmul.f32 %v215_v13, %v97_v10  ;;  %vm156_vm13 = vweird.f32 %v215_v13 }
  0xc3   :  { %vm157_vm15 = vmor %vm155_vm14, %vm156_vm13 }
  0xc4   :  { %v152_v16 = vsub.f32 1.0, %v151_v15 }
  0xc6   :  { %v153_v19 = vmul.f32 %v215_v13, %v152_v16 }
  0xc8   :  { %v154_v21 = vadd.f32 %v215_v13, %v153_v19 }
  0xca   :  { %v158_v24 = vsel %vm157_vm15, %v215_v13, %v154_v21 }
  0xcb   :  { %v163_v25 = vsel %vm160_vm0, %v162_v22, %v158_v24 }
  0xcc   :  { %v164_v26 = vmul.f32 %v163_v25, %v149_v23 }
  0xce   :  { %166 = vst.msk [vmem:[#allocation2] sm:$0x1] %vm165_vm1, %v164_v26 }
  0xcf   :  { %177 = dma.vmem_to_hbm [thread:$0]  %s173_s2, 16, %s175_s29, [#allocation3]  }
  0xd0   :  { %240 = dma.done.wait [#allocation3], 16  }
  0xd1   :  { %241 = vsyncadd [#allocation3], 4294967280 }
  0xd2   :  { %182 = vsyncpa [#allocation3], 1 }

</bundles_post_ra>
